<compile_context>
chip_gen: v7x
topology: tpu7x:2x2x1
jax: 0.10.0
libtpu: 0.0.40
codegen_flags: <defaults>
</compile_context>

<pallas_src>
import jax
import jax.numpy as jnp
from jax.experimental import pallas as pl
from jax.experimental.pallas import tpu as pltpu


def linkpred_kernel(xi_ref, xj_ref,
                    w1_ref, b1_ref,
                    w2_ref, b2_ref,
                    w3_ref, b3_ref,
                    out_ref):
    # Elementwise product of the node embeddings on the f32 VPU path
    # (exact on v5e, which has no bf16 VALU).  Blocks are feature-major
    # (Cin, tb): batch on the lane axis, fully dense.
    x = xi_ref[...] * xj_ref[...]                                    # (Cin, tb) f32

    # Layer 1: h = relu(W1 @ x + b1) -> (H, tb).
    # bf16 x bf16 MXU operands (single-pass vmatmul), f32 accumulation.
    h = jnp.dot(w1_ref[...], x.astype(jnp.bfloat16),
                preferred_element_type=jnp.float32)                  # (H, tb)
    h = jnp.maximum(h + b1_ref[...], 0.0)                            # b1: (H, 1)

    # Layer 2: h = relu(W2 @ h + b2) -> (H, tb).
    h = jnp.dot(w2_ref[...], h.astype(jnp.bfloat16),
                preferred_element_type=jnp.float32)
    h = jnp.maximum(h + b2_ref[...], 0.0)

    # Final (H -> 1) layer: VPU multiply + XLU sublane reduction instead of a
    # 1-lane MXU matmul; result is already the lane-dense (1, tb) output slab.
    o = jnp.sum(h * w3_ref[...], axis=0, keepdims=True) + b3_ref[0]  # (1, tb)
    out_ref[...] = jax.nn.sigmoid(o).astype(out_ref.dtype)


def _pick_tb(n, tb_max=8192, tb_min=512):
    """Largest power-of-two tile <= tb_max that still gives a grid of >= 4
    steps (2 TCs x >= 2 steps on v7x); big tiles amortize the ~0.35 us/step
    pipeline overhead on every generation."""
    tb = tb_max
    while tb > tb_min and pl.cdiv(n, tb) < 4:
        tb //= 2
    return tb


def link_predictor(x_i_t, x_j_t, params, *, tb=None):
    """x_i_t / x_j_t are FEATURE-MAJOR embeddings: shape (Cin, N).

    params (PyTorch Linear layouts for the hidden layers):
      w1 (H, Cin), b1 (H, 1), w2 (H, H), b2 (H, 1),
      w3 (H, 1)  [= PyTorch (1, H) weight stored transposed], b3 (1, 1).

    Returns (N, 1) f32 probabilities.
    TODO(synk): callers holding row-major (N, Cin) embeddings should emit the
                feature-major layout upstream (one-time transpose) instead of
                paying an extra HBM pass here.
    """
    Cin, N = x_i_t.shape
    H = params["w1"].shape[0]
    # TODO(synk): kernel is specialized for out_channels == 1 (the
    #             LinkPredictor use case); general Cout would use a
    #             (Cout, H) @ (H, tb) matmul.
    assert params["w3"].shape == (H, 1), "kernel specialized for out_channels == 1"
    if tb is None:
        tb = _pick_tb(N)
    assert tb % 128 == 0, "tb must be a multiple of the 128-wide lane axis"

    grid = (int(pl.cdiv(N, tb)),)   # ragged tail handled by Pallas masking

    # Weights are tiny: cast once to bf16 for single-pass MXU operands.
    # Biases and w3 stay f32 (VPU path); b3 becomes an SMEM scalar.
    w1 = params["w1"].astype(jnp.bfloat16)
    w2 = params["w2"].astype(jnp.bfloat16)
    b3 = params["b3"].reshape(1).astype(jnp.float32)

    col_map = lambda i: (0, i)       # batch-tiled (lane-axis) blocks
    full_map = lambda i: (0, 0)      # resident weights / biases

    out = pl.pallas_call(
        linkpred_kernel,
        out_shape=jax.ShapeDtypeStruct((1, N), jnp.float32),
        grid_spec=pltpu.PrefetchScalarGridSpec(
            num_scalar_prefetch=0,
            grid=grid,
            in_specs=[
                pl.BlockSpec((Cin, tb), col_map),     # x_i (feature-major)
                pl.BlockSpec((Cin, tb), col_map),     # x_j (feature-major)
                pl.BlockSpec((H, Cin), full_map),     # w1  (out, in) bf16
                pl.BlockSpec((H, 1), full_map),       # b1
                pl.BlockSpec((H, H), full_map),       # w2  (out, in) bf16
                pl.BlockSpec((H, 1), full_map),       # b2
                pl.BlockSpec((H, 1), full_map),       # w3  (in, 1) f32
                pl.BlockSpec(memory_space=pltpu.MemorySpace.SMEM),  # b3 scalar
            ],
            out_specs=pl.BlockSpec((1, tb), col_map),
        ),
        compiler_params=pltpu.CompilerParams(
            dimension_semantics=("parallel",)),
    )(x_i_t, x_j_t,
      w1, params["b1"],
      w2, params["b2"],
      params["w3"], b3)

    return out.reshape(N, 1)


def init_params(key, in_channels, hidden_channels, out_channels):
    """Deterministic init mimicking torch.nn.Linear default (uniform +-1/sqrt(fan_in)).
    Weights stored in PyTorch (out, in) layout; final layer stored as (in, 1)."""
    ks = jax.random.split(key, 6)

    def lin(kw, kb, fan_in, w_shape, b_shape):
        bound = 1.0 / jnp.sqrt(fan_in)
        w = jax.random.uniform(kw, w_shape, jnp.float32, -bound, bound)
        b = jax.random.uniform(kb, b_shape, jnp.float32, -bound, bound)
        return w, b

    w1, b1 = lin(ks[0], ks[1], in_channels,
                 (hidden_channels, in_channels), (hidden_channels, 1))
    w2, b2 = lin(ks[2], ks[3], hidden_channels,
                 (hidden_channels, hidden_channels), (hidden_channels, 1))
    w3, b3 = lin(ks[4], ks[5], hidden_channels,
                 (hidden_channels, out_channels), (1, out_channels))
    # alpha / theta are unused in forward(); kept for shape parity.
    alpha = jnp.full((1,), 0.5, jnp.float32)
    theta = jnp.full((1,), 2.0, jnp.float32)
    return dict(w1=w1, b1=b1, w2=w2, b2=b2, w3=w3, b3=b3,
                alpha=alpha, theta=theta)


def link_predictor_ref(x_i, x_j, p):
    """Pure-JAX reference mirroring the kernel's bf16 rounding points.
    x_i / x_j are row-major (N, Cin) here (PyTorch orientation)."""
    hi = jax.lax.Precision.HIGHEST
    bf = lambda a: a.astype(jnp.bfloat16).astype(jnp.float32)
    x = bf(x_i * x_j)
    h = jnp.maximum(jnp.dot(x, bf(p["w1"]).T, precision=hi) + p["b1"].T, 0.0)
    h = bf(h)
    h = jnp.maximum(jnp.dot(h, bf(p["w2"]).T, precision=hi) + p["b2"].T, 0.0)
    return jax.nn.sigmoid(jnp.dot(h, p["w3"], precision=hi) + p["b3"])


if __name__ == "__main__":
    # Shapes implied by the module: num_layers=3, in=hidden=32, out=1.
    # N is deliberately not a multiple of the tile (exercises the ragged last
    # block) and large enough that the adaptive tb yields a multi-step grid.
    N, IN_CH, HID, OUT_CH = 4100, 32, 32, 1

    key = jax.random.PRNGKey(0)
    k_xi, k_xj, k_p = jax.random.split(key, 3)
    # Producer emits the embeddings feature-major (Cin, N): this is the layout
    # the kernel consumes directly (no wrapper cast / pad / transpose).
    x_i_t = jax.random.normal(k_xi, (IN_CH, N), jnp.float32)
    x_j_t = jax.random.normal(k_xj, (IN_CH, N), jnp.float32)
    params = init_params(k_p, IN_CH, HID, OUT_CH)

    out = link_predictor(x_i_t, x_j_t, params)
    out = jax.block_until_ready(out)

    # Reference uses f32 math (HIGHEST precision) with the same bf16 rounding
    # points as the kernel's MXU operands.
    ref = link_predictor_ref(x_i_t.T, x_j_t.T, params)

    assert out.shape == (N, OUT_CH)
    assert jnp.allclose(out, ref, atol=5e-3, rtol=5e-3), "mismatch vs JAX reference"

    print("KERNEL_OK")
</pallas_src>

<mosaic_0001>
module attributes {stable_mosaic.version = 11 : i64} {
  func.func @linkpred_kernel(%arg0: i32, %arg1: memref<32x1024xf32, #tpu.memory_space<vmem>>, %arg2: memref<32x1024xf32, #tpu.memory_space<vmem>>, %arg3: memref<32x32xbf16, #tpu.memory_space<vmem>>, %arg4: memref<32x1xf32, #tpu.memory_space<vmem>>, %arg5: memref<32x32xbf16, #tpu.memory_space<vmem>>, %arg6: memref<32x1xf32, #tpu.memory_space<vmem>>, %arg7: memref<32x1xf32, #tpu.memory_space<vmem>>, %arg8: memref<1xf32, #tpu.memory_space<smem>>, %arg9: memref<1x1024xf32, #tpu.memory_space<vmem>>) attributes {dimension_semantics = [#tpu.dimension_semantics<parallel>], iteration_bounds = array<i64: 5>, scalar_prefetch = 0 : i64, scratch_operands = 0 : i64, tpu.core_type = #tpu.core_type<tc>, window_params = [{transform_indices = @transform_0, window_bounds = array<i64: 32, 1024>}, {transform_indices = @transform_1, window_bounds = array<i64: 32, 1024>}, {pipeline_mode = #tpu.pipeline_mode<synchronous>, transform_indices = @transform_2, window_bounds = array<i64: 32, 32>}, {pipeline_mode = #tpu.pipeline_mode<synchronous>, transform_indices = @transform_3, window_bounds = array<i64: 32, 1>}, {pipeline_mode = #tpu.pipeline_mode<synchronous>, transform_indices = @transform_4, window_bounds = array<i64: 32, 32>}, {pipeline_mode = #tpu.pipeline_mode<synchronous>, transform_indices = @transform_5, window_bounds = array<i64: 32, 1>}, {pipeline_mode = #tpu.pipeline_mode<synchronous>, transform_indices = @transform_6, window_bounds = array<i64: 32, 1>}, {transform_indices = @transform_7, window_bounds = array<i64: 1>}, {transform_indices = @transform_8, window_bounds = array<i64: 1, 1024>}]} {
    %c0 = arith.constant 0 : index
    %c0_0 = arith.constant 0 : index
    %0 = vector.load %arg1[%c0, %c0_0] : memref<32x1024xf32, #tpu.memory_space<vmem>>, vector<32x1024xf32>
    %c0_1 = arith.constant 0 : index
    %c0_2 = arith.constant 0 : index
    %1 = vector.load %arg2[%c0_1, %c0_2] : memref<32x1024xf32, #tpu.memory_space<vmem>>, vector<32x1024xf32>
    %2 = arith.mulf %0, %1 : vector<32x1024xf32>
    %c0_3 = arith.constant 0 : index
    %c0_4 = arith.constant 0 : index
    %3 = vector.load %arg3[%c0_3, %c0_4] : memref<32x32xbf16, #tpu.memory_space<vmem>>, vector<32x32xbf16>
    %4 = arith.truncf %2 : vector<32x1024xf32> to vector<32x1024xbf16>
    %cst = arith.constant dense<0.000000e+00> : vector<32x1024xf32>
    %5 = tpu.matmul %3, %4, %cst {dimension_numbers = #tpu.dot_dimension_numbers<[1], [0], [0], [1], [0, 0, 1, 1], [], []>} : vector<32x32xbf16>, vector<32x1024xbf16>, vector<32x1024xf32> -> vector<32x1024xf32>
    %c0_5 = arith.constant 0 : index
    %c0_6 = arith.constant 0 : index
    %6 = vector.load %arg4[%c0_5, %c0_6] : memref<32x1xf32, #tpu.memory_space<vmem>>, vector<32x1xf32>
    %7 = vector.broadcast %6 : vector<32x1xf32> to vector<32x1024xf32>
    %8 = arith.addf %5, %7 : vector<32x1024xf32>
    %cst_7 = arith.constant 0.000000e+00 : f32
    %9 = vector.broadcast %cst_7 : f32 to vector<32x1024xf32>
    %10 = arith.maximumf %8, %9 : vector<32x1024xf32>
    %c0_8 = arith.constant 0 : index
    %c0_9 = arith.constant 0 : index
    %11 = vector.load %arg5[%c0_8, %c0_9] : memref<32x32xbf16, #tpu.memory_space<vmem>>, vector<32x32xbf16>
    %12 = arith.truncf %10 : vector<32x1024xf32> to vector<32x1024xbf16>
    %cst_10 = arith.constant dense<0.000000e+00> : vector<32x1024xf32>
    %13 = tpu.matmul %11, %12, %cst_10 {dimension_numbers = #tpu.dot_dimension_numbers<[1], [0], [0], [1], [0, 0, 1, 1], [], []>} : vector<32x32xbf16>, vector<32x1024xbf16>, vector<32x1024xf32> -> vector<32x1024xf32>
    %c0_11 = arith.constant 0 : index
    %c0_12 = arith.constant 0 : index
    %14 = vector.load %arg6[%c0_11, %c0_12] : memref<32x1xf32, #tpu.memory_space<vmem>>, vector<32x1xf32>
    %15 = vector.broadcast %14 : vector<32x1xf32> to vector<32x1024xf32>
    %16 = arith.addf %13, %15 : vector<32x1024xf32>
    %cst_13 = arith.constant 0.000000e+00 : f32
    %17 = vector.broadcast %cst_13 : f32 to vector<32x1024xf32>
    %18 = arith.maximumf %16, %17 : vector<32x1024xf32>
    %c0_14 = arith.constant 0 : index
    %c0_15 = arith.constant 0 : index
    %19 = vector.load %arg7[%c0_14, %c0_15] : memref<32x1xf32, #tpu.memory_space<vmem>>, vector<32x1xf32>
    %20 = vector.broadcast %19 : vector<32x1xf32> to vector<32x1024xf32>
    %21 = arith.mulf %18, %20 : vector<32x1024xf32>
    %cst_16 = arith.constant dense<0.000000e+00> : vector<1024xf32>
    %22 = vector.multi_reduction <add>, %21, %cst_16 [0] : vector<32x1024xf32> to vector<1024xf32>
    %23 = vector.shape_cast %22 : vector<1024xf32> to vector<1x1024xf32>
    %c0_17 = arith.constant 0 : index
    %24 = memref.load %arg8[%c0_17] : memref<1xf32, #tpu.memory_space<smem>>
    %25 = vector.broadcast %24 : f32 to vector<1x1024xf32>
    %26 = arith.addf %23, %25 : vector<1x1024xf32>
    %27 = arith.negf %26 : vector<1x1024xf32>
    %28 = math.exp %27 : vector<1x1024xf32>
    %cst_18 = arith.constant 1.000000e+00 : f32
    %29 = vector.broadcast %cst_18 : f32 to vector<1x1024xf32>
    %30 = arith.addf %29, %28 : vector<1x1024xf32>
    %31 = arith.divf %29, %30 : vector<1x1024xf32>
    %c0_19 = arith.constant 0 : index
    %c0_20 = arith.constant 0 : index
    %32 = vector.load %arg9[%c0_19, %c0_20] : memref<1x1024xf32, #tpu.memory_space<vmem>>, vector<1x1024xf32>
    tpu.vector_store %arg9[%c0_19, %c0_20], %31 {strides = array<i32>} : memref<1x1024xf32, #tpu.memory_space<vmem>>, vector<1x1024xf32>,
    return
  }
  func.func @transform_0(%arg0: i32) -> (i32, i32) {
    %c0_i32 = arith.constant 0 : i32
    %c0_i32_0 = arith.constant 0 : i32
    return %c0_i32, %arg0 : i32, i32
  }
  func.func @transform_1(%arg0: i32) -> (i32, i32) {
    %c0_i32 = arith.constant 0 : i32
    %c0_i32_0 = arith.constant 0 : i32
    return %c0_i32, %arg0 : i32, i32
  }
  func.func @transform_2(%arg0: i32) -> (i32, i32) {
    %c0_i32 = arith.constant 0 : i32
    %c0_i32_0 = arith.constant 0 : i32
    %c0_i32_1 = arith.constant 0 : i32
    return %c0_i32, %c0_i32_0 : i32, i32
  }
  func.func @transform_3(%arg0: i32) -> (i32, i32) {
    %c0_i32 = arith.constant 0 : i32
    %c0_i32_0 = arith.constant 0 : i32
    %c0_i32_1 = arith.constant 0 : i32
    return %c0_i32, %c0_i32_0 : i32, i32
  }
  func.func @transform_4(%arg0: i32) -> (i32, i32) {
    %c0_i32 = arith.constant 0 : i32
    %c0_i32_0 = arith.constant 0 : i32
    %c0_i32_1 = arith.constant 0 : i32
    return %c0_i32, %c0_i32_0 : i32, i32
  }
  func.func @transform_5(%arg0: i32) -> (i32, i32) {
    %c0_i32 = arith.constant 0 : i32
    %c0_i32_0 = arith.constant 0 : i32
    %c0_i32_1 = arith.constant 0 : i32
    return %c0_i32, %c0_i32_0 : i32, i32
  }
  func.func @transform_6(%arg0: i32) -> (i32, i32) {
    %c0_i32 = arith.constant 0 : i32
    %c0_i32_0 = arith.constant 0 : i32
    %c0_i32_1 = arith.constant 0 : i32
    return %c0_i32, %c0_i32_0 : i32, i32
  }
  func.func @transform_7(%arg0: i32) -> i32 {
    %c0_i32 = arith.constant 0 : i32
    %c0_i32_0 = arith.constant 0 : i32
    return %c0_i32 : i32
  }
  func.func @transform_8(%arg0: i32) -> (i32, i32) {
    %c0_i32 = arith.constant 0 : i32
    %c0_i32_0 = arith.constant 0 : i32
    return %c0_i32, %arg0 : i32, i32
  }
}

</mosaic_0001>

<bundles_post_ra>
// kernel: tpu_custom_call.1
= control target key start
LH: loop header
LB: loop body
LE: loop exit
PB: predicated region body
PF: predicated region fallthrough
CT: control target
= control target key end

     0   :  { %s2313_s0 = inlined_call_operand.hbm [shape: f32[32,4100], index: 0, kind: input, shape index: {}]   ;;  %s2314_s1 = inlined_call_operand.hbm [shape: f32[32,4100], index: 1, kind: input, shape index: {}]   ;;  %s2315_s2 = inlined_call_operand.vmem [shape: bf16[32,32], index: 2, kind: input, shape index: {}]   ;;  %s2316_s3 = inlined_call_operand.vmem [shape: f32[32,1], index: 3, kind: input, shape index: {}]   ;;  %s2317_s4 = inlined_call_operand.vmem [shape: bf16[32,32], index: 4, kind: input, shape index: {}]   ;;  %s2318_s5 = inlined_call_operand.vmem [shape: f32[32,1], index: 5, kind: input, shape index: {}]   ;;  %s2319_s6 = inlined_call_operand.vmem [shape: f32[32,1], index: 6, kind: input, shape index: {}]   ;;  %s2320_s7 = inlined_call_operand.<no memory space> [shape: f32[1], index: 7, kind: input, shape index: {}]   ;;  %s2321_s8 = inlined_call_operand.hbm [shape: f32[1,4100], index: 8, kind: output, shape index: {}]  }
   0x1   :  { %13 = sst [smem:[#allocation2]] %s2320_s7 }
   0x2   :  { %14 = vsyncpa [#allocation4], 0 }
   0x3   :  { %16 = vsyncpa [#allocation4 + $0x1], 0 }
   0x4   :  { %17 = vsyncpa [#allocation7], 0 }
   0x5   :  { %19 = vsyncpa [#allocation7 + $0x1], 0 }
   0x6   :  { %20 = vsyncpa [#allocation5], 0 }
   0x7   :  { %22 = vsyncpa [#allocation5 + $0x1], 0  ;;  %s1792_s29 = smov 0   ;;  %s1794_s30 = smov 0  }
   0x8   :  { %s1796_s9 = smov 0   ;;  %s1798_s10 = smov 0  }
   0x9 LB: > { %s1813_s7 = sadd.s32 4294967295, %s1733_s10   ;;  %s1458_s11 = sadd.s32 4294967294, %s1733_s10   ;;  %s1733_s10 = sphi %s1798_s10, %s2332_s10   ;;  %s1729_s9 = sphi %s1796_s9, %s2336_s9   ;;  %s1725_s30 = sphi %s1794_s30, %s2335_s30   ;;  %s1721_s29 = sphi %s1792_s29, %s2334_s29  }
   0xa   : > { %s1817_s12 = sadd.s32 1, %s1733_s10   ;;  %s35_s13 = sadd.s32 1, %s1729_s9 }
   0xb   : > { %2324 = sst [smem:[#allocation12_spill]] %s1817_s12  ;;  %s32_s14 = ssub.s32 %s1733_s10, %s1817_s12 }
   0xc   : > { %p42_p0 = scmp.ne.s32.totalorder %s1729_s9, %s1725_s30  ;;  %p33_p1 = scmp.eq.s32.totalorder %s32_s14, 0 }
   0xd   : > { %p43_p2 = scmp.eq.s32.totalorder %s1733_s10, 0  ;;  %p48_p3 = scmp.ne.s32.totalorder %s1725_s30, %s1721_s29 }
   0xe   : > { %p49_p4 = scmp.eq.s32.totalorder %s1813_s7, 0  ;;  %p224_p7 = scmp.eq.s32.totalorder %s1813_s7, 4 }
   0xf   : > { %s1829_s15 = scalar_select %p33_p1, %s1729_s9, %s35_s13  }
  0x10   : > { %p1831_p5 = por %p43_p2, %p42_p0  ;;  %p1835_p6 = por %p49_p4, %p48_p3 }
  0x11   : > { %2325 = sst [smem:[#allocation13_spill]] %s1829_s15  ;;  %p230_p8 = scmp.eq.s32.totalorder %s1458_s11, 4 }
  0x12   : > { %p1840_p9 = por %p224_p7, %p42_p0  ;;  %p1460_p11 = scmp.ge.s32.totalorder %s1733_s10, 5 }
  0x13   : > { %p1844_p10 = por %p230_p8, %p48_p3 }
  0x14   : > { %s2328_s18 = scalar_select %p1840_p9, 1, 0 }
  0x15   : > { %s2329_s19 = scalar_select %p1844_p10, 1, 0 }
  0x16   : > { %264 = sbr.rel (%p1460_p11) target bundleno = 99 (0x63), region = 40 }
  0x1d   : > { %267 = sbr.rel (!%p1831_p5) target bundleno = 64 (0x40), region = 44  ;;  %s268_s20 = sand.u32 (%p1831_p5), 1, %s1729_s9  }
  0x1e   : > { %s1462_s21 = sshll.u32 (%p1831_p5), %s1733_s10, 3  ;;  %s1461_s22 = sshll.u32 (%p1831_p5), %s268_s20, 8 }
  0x1f   : > { %s274_s23 = ssub.s32 (%p1831_p5), 33, %s1462_s21  ;;  %s1859_s26 = scalar_lea.sflag (%p1831_p5), [#allocation4], %s268_s20 }
  0x20   : > { %p275_p12 = scmp.lt.s32.totalorder (%p1831_p5), %s274_s23, 8  ;;  %s272_s27 = scalar_lea.vmem (%p1831_p5), [#allocation3], %s1461_s22 }
  0x24   : > { %s2338_s23 = smov (!%p275_p12, %s274_s23), 8 }
  0x25   : > { %s1856_s24 = sshll.u32 %s2338_s23, 9 }
  0x26   : > { %s279_s25 = ssub.s32 4096, %s1856_s24 }
  0x27   : > { %280 = vsyncadd %s1859_s26, %s279_s25  ;;  %p1464_p13 = scmp.ne.s32.totalorder %s1856_s24, 0  ;;  %s1516_s28 = sshll.u32 %s1733_s10, 10 }
  0x28   : > { %s1867_s14 = scalar_lea.hbm %s2313_s0, %s1516_s28  ;;  %s1466_s20 = sshll.u32 %s2338_s23, 3 }
  0x29   : > { %s286_s21 = sshll.u32 %s272_s27, 4  ;;  %s1607_s22 = scalar_lea.hbm %s1867_s14, %s1856_s24  ;;  %s1870_s21 = int_to_ptr.vmem [resolvable:$true] %s286_s21 }
  0x2a   : > { %p1608_p0 = scmp.ne.s32.totalorder %s1867_s14, %s1607_s22  ;;  %s1611_s12 = scalar_lea.hbm %s2313_s0, 16896 }
  0x2b   : > { %p1612_p3 = scmp.lt.u32.totalorder %s1867_s14, %s2313_s0  ;;  %p1613_p4 = scmp.lt.u32.totalorder %s1611_s12, %s1607_s22 }
  0x2c   : > { %p1609_p1 = pnand %p1608_p0, %p1464_p13  ;;  %p1615_p8 = scmp.lt.u32.totalorder %s1607_s22, %s1867_s14 }
  0x2d   : > { %p1614_p7 = por %p1613_p4, %p1612_p3 }
  0x2e   : > { %p1610_p2 = pneg %p1609_p1 }
  0x2f   : > { %p1616_p11 = por %p1615_p8, %p1614_p7 }
  0x31   : > { %p1617_p12 = pnand %p1616_p11, %p1610_p2 }
  0x33   : > { %1620 = shalt.err (!%p1617_p12)
}
  0x34   : > { %s1621_s27 = scalar_lea.vmem %s1870_s21, %s1856_s24  ;;  %s1735_s15 = smov [#allocation3]  }
  0x35   : > { %p1622_p0 = scmp.ne.s32.totalorder %s1870_s21, %s1621_s27  ;;  %s1625_s13 = sshll.u32 %s1735_s15, 4  ;;  %s1626_s13 = int_to_ptr.vmem [resolvable:$false] %s1625_s13 }
  0x36   : > { %s1627_s25 = scalar_lea.vmem %s1626_s13, 8192  ;;  %p1628_p9 = scmp.lt.s32.totalorder %s1870_s21, %s1626_s13 }
  0x37   : > { %p1623_p1 = pnand %p1622_p0, %p1464_p13  ;;  %p1629_p3 = scmp.lt.s32.totalorder %s1627_s25, %s1621_s27 }
  0x39   : > { %p1624_p10 = pneg %p1623_p1  ;;  %p1630_p4 = por %p1629_p3, %p1628_p9 }
  0x3b   : > { %p1631_p7 = pnand %p1630_p4, %p1624_p10 }
  0x3d   : > { %1634 = shalt.err (!%p1631_p7)
}
  0x3e   : > { %s1736_s12 = smov 4224   ;;  %s1737_s22 = smov 1024  }
  0x3f   : > { %292 = dma.hbm_to_vmem [thread:$0]  (%p1464_p13), %s1867_s14, %s1856_s24, %s1870_s21, %s1859_s26, %s1736_s12, %s1737_s22, %s1466_s20  }
  0x40 PF: > { %295 = sbr.rel (!%p1831_p5) target bundleno = 99 (0x63), region = 48  ;;  %s296_s11 = sand.u32 (%p1831_p5), 1, %s1729_s9  }
  0x41   : > { %s1470_s28 = sshll.u32 (%p1831_p5), %s1733_s10, 3  ;;  %s1469_s27 = sshll.u32 (%p1831_p5), %s296_s11, 8 }
  0x42   : > { %s302_s15 = ssub.s32 (%p1831_p5), 33, %s1470_s28  ;;  %s1909_s23 = scalar_lea.sflag (%p1831_p5), [#allocation7], %s296_s11 }
  0x43   : > { %p303_p9 = scmp.lt.s32.totalorder (%p1831_p5), %s302_s15, 8  ;;  %s300_s24 = scalar_lea.vmem (%p1831_p5), [#allocation6], %s1469_s27 }
  0x47   : > { %s2340_s15 = smov (!%p303_p9, %s302_s15), 8 }
  0x48   : > { %s1906_s13 = sshll.u32 %s2340_s15, 9 }
  0x49   : > { %s307_s25 = ssub.s32 4096, %s1906_s13 }
  0x4a   : > { %308 = vsyncadd %s1909_s23, %s307_s25  ;;  %p1472_p5 = scmp.ne.s32.totalorder %s1906_s13, 0  ;;  %s1519_s16 = sshll.u32 %s1733_s10, 10 }
  0x4b   : > { %s1917_s20 = scalar_lea.hbm %s2314_s1, %s1519_s16  ;;  %s1474_s21 = sshll.u32 %s2340_s15, 3 }
  0x4c   : > { %s314_s12 = sshll.u32 %s300_s24, 4  ;;  %s1635_s22 = scalar_lea.hbm %s1917_s20, %s1906_s13  ;;  %s1920_s12 = int_to_ptr.vmem [resolvable:$true] %s314_s12 }
  0x4d   : > { %p1636_p10 = scmp.ne.s32.totalorder %s1917_s20, %s1635_s22  ;;  %s1639_s27 = scalar_lea.hbm %s2314_s1, 16896 }
  0x4e   : > { %p1640_p8 = scmp.lt.u32.totalorder %s1917_s20, %s2314_s1  ;;  %p1641_p11 = scmp.lt.u32.totalorder %s1639_s27, %s1635_s22 }
  0x4f   : > { %p1637_p13 = pnand %p1636_p10, %p1472_p5  ;;  %p1643_p0 = scmp.lt.u32.totalorder %s1635_s22, %s1917_s20 }
  0x50   : > { %p1642_p12 = por %p1641_p11, %p1640_p8 }
  0x51   : > { %p1638_p2 = pneg %p1637_p13 }
  0x52   : > { %p1644_p1 = por %p1643_p0, %p1642_p12 }
  0x54   : > { %p1645_p3 = pnand %p1644_p1, %p1638_p2 }
  0x56   : > { %1648 = shalt.err (!%p1645_p3)
}
  0x57   : > { %s1649_s24 = scalar_lea.vmem %s1920_s12, %s1906_s13  ;;  %s1738_s26 = smov [#allocation6]  }
  0x58   : > { %p1650_p4 = scmp.ne.s32.totalorder %s1920_s12, %s1649_s24  ;;  %s1653_s14 = sshll.u32 %s1738_s26, 4  ;;  %s1654_s14 = int_to_ptr.vmem [resolvable:$false] %s1653_s14 }
  0x59   : > { %s1655_s11 = scalar_lea.vmem %s1654_s14, 8192  ;;  %p1656_p10 = scmp.lt.s32.totalorder %s1920_s12, %s1654_s14 }
  0x5a   : > { %p1651_p7 = pnand %p1650_p4, %p1472_p5  ;;  %p1657_p13 = scmp.lt.s32.totalorder %s1655_s11, %s1649_s24 }
  0x5c   : > { %p1652_p9 = pneg %p1651_p7  ;;  %p1658_p8 = por %p1657_p13, %p1656_p10 }
  0x5e   : > { %p1659_p11 = pnand %p1658_p8, %p1652_p9 }
  0x60   : > { %1662 = shalt.err (!%p1659_p11)
}
  0x61   : > { %s1739_s22 = smov 4224   ;;  %s1740_s28 = smov 1024  }
  0x62   : > { %320 = dma.hbm_to_vmem [thread:$0]  (%p1472_p5), %s1917_s20, %s1906_s13, %s1920_s12, %s1909_s23, %s1739_s22, %s1740_s28, %s1474_s21  }
  0x63 PF: > { %p1477_p2 = scmp.ge.s32.totalorder %s1733_s10, 1  ;;  %p322_p12 = scmp.lt.s32.totalorder %s1733_s10, 6 }
  0x65   : > { %p323_p0 = pnand %p1477_p2, %p322_p12 }
  0x66   : > { %s1952_s27 = sand.u32 (!%p323_p0), 1, %s1725_s30  }
  0x67   : > { %326 = sbr.rel (%p323_p0) target bundleno = 702 (0x2be), region = 52  ;;  %s1478_s25 = sshll.u32 (!%p323_p0), %s1952_s27, 8 }
  0x68   : > { %s329_s16 = scalar_lea.sflag (!%p323_p0), [#allocation4], %s1952_s27  ;;  %s1956_s24 = scalar_lea.vmem (!%p323_p0), [#allocation3], %s1478_s25 }
  0x6e   : > { %1708 = dma.done.wait (%p1835_p6), %s329_s16, 4096  }
  0x6f   : > { %1710 = vsyncadd (%p1835_p6), %s329_s16, 4294963200  ;;  %s338_s15 = scalar_lea.sflag [#allocation7], %s1952_s27  ;;  %s1963_s13 = scalar_lea.vmem [#allocation6], %s1478_s25 }
  0x70   : > { %1712 = dma.done.wait (%p1835_p6), %s338_s15, 4096  }
  0x71   : > { %1714 = vsyncadd (%p1835_p6), %s338_s15, 4294963200  ;;  %v1741_v0 = vmov 0   ;;  %v396_v1 = vld [vmem:[%s1956_s24 + $0x8] sm:$0xff]  ;;  %v398_v6 = vld [vmem:[%s1956_s24 + $0x18] sm:$0xff]  ;;  %vm545_vm0 = vcmask 261120   ;;  %s1228_s20 = sld [smem:[#allocation2]] }
  0x72   : > { %584 = vmatprep.mubr.bf16.mxu0 %v1741_v0  ;;  %637 = vmatprep.mubr.bf16.mxu1 %v1741_v0  ;;  %v404_v2 = vld [vmem:[%s1956_s24 + $0x48] sm:$0xff]  ;;  %v406_v7 = vld [vmem:[%s1956_s24 + $0x58] sm:$0xff]  ;;  %v395_v11 = vld [vmem:[%s1956_s24] sm:$0xff]  ;;  %s1480_s21 = sshll.u32 %s1952_s27, 3  ;;  %s1346_s26 = scalar_lea.sflag [#allocation5], %s1952_s27 }
  0x73   : > { %1569 = vset.pattern.permute.xlu0 %v1741_v0  ;;  %1570 = vset.pattern.permute.xlu1 %v1741_v0  ;;  %v428_v3 = vld [vmem:[%s1963_s13 + $0x8] sm:$0xff]  ;;  %v430_v9 = vld [vmem:[%s1963_s13 + $0x18] sm:$0xff]  ;;  %v403_v14 = vld [vmem:[%s1956_s24 + $0x40] sm:$0xff]  ;;  %s378_s12 = scalar_lea.vmem [#allocation8], %s1480_s21  ;;  %p2330_p6 = scmp.ne.s32.totalorder %s2328_s18, 0 }
  0x74   : > { %v436_v4 = vld [vmem:[%s1963_s13 + $0x48] sm:$0xff]  ;;  %v460_v5 = vmul.f32 %v428_v3, %v396_v1  ;;  %v438_v10 = vld [vmem:[%s1963_s13 + $0x58] sm:$0xff]  ;;  %v462_v12 = vmul.f32 %v430_v9, %v398_v6  ;;  %v427_v15 = vld [vmem:[%s1963_s13] sm:$0xff]  ;;  %s1510_s14 = sshll.u32 (%p2330_p6), %s1813_s7, 3 }
  0x75   : > { %v468_v8 = vmul.f32 %v436_v4, %v404_v2  ;;  %v470_v13 = vmul.f32 %v438_v10, %v406_v7  ;;  %v435_v16 = vld [vmem:[%s1963_s13 + $0x40] sm:$0xff]  ;;  %v459_v18 = vmul.f32 %v427_v15, %v395_v11  ;;  %v397_v20 = vld [vmem:[%s1956_s24 + $0x10] sm:$0xff]  ;;  %v412_v26 = vld [vmem:[%s1956_s24 + $0x88] sm:$0xff]  ;;  %s1354_s11 = ssub.s32 (%p2330_p6), 33, %s1510_s14 }
  0x76   : > { %v467_v19 = vmul.f32 %v435_v16, %v403_v14  ;;  %v405_v21 = vld [vmem:[%s1956_s24 + $0x50] sm:$0xff]  ;;  %v420_v27 = vld [vmem:[%s1956_s24 + $0xc8] sm:$0xff]  ;;  %v414_v32 = vld [vmem:[%s1956_s24 + $0x98] sm:$0xff]  ;;  %p1355_p5 = scmp.lt.s32.totalorder (%p2330_p6), %s1354_s11, 8 }
  0x77   : > { %v496_v17 = vpack.c.bf16 %v468_v8, %v460_v5  ;;  %v429_v22 = vld [vmem:[%s1963_s13 + $0x10] sm:$0xff]  ;;  %v498_v23 = vpack.c.bf16 %v470_v13, %v462_v12  ;;  %v444_v30 = vld [vmem:[%s1963_s13 + $0x88] sm:$0xff]  ;;  %v422_v35 = vld [vmem:[%s1956_s24 + $0xd8] sm:$0xff] }
  0x78   : > { %v437_v24 = vld [vmem:[%s1963_s13 + $0x50] sm:$0xff]  ;;  %v461_v25 = vmul.f32 %v429_v22, %v397_v20  ;;  %v495_v28 = vpack.c.bf16 %v467_v19, %v459_v18  ;;  %v452_v31 = vld [vmem:[%s1963_s13 + $0xc8] sm:$0xff]  ;;  %v476_v33 = vmul.f32 %v444_v30, %v412_v26  ;;  %v446_v36 = vld [vmem:[%s1963_s13 + $0x98] sm:$0xff] }
  0x79   : > { %552 = vmatprep.subr.bf16.mxu0 %v496_v17  ;;  %v469_v29 = vmul.f32 %v437_v24, %v405_v21  ;;  %605 = vmatprep.subr.bf16.mxu1 %v498_v23  ;;  %v484_v34 = vmul.f32 %v452_v31, %v420_v27  ;;  %v454_v37 = vld [vmem:[%s1963_s13 + $0xd8] sm:$0xff]  ;;  %v478_v39 = vmul.f32 %v446_v36, %v414_v32  ;;  %v411_v41 = vld [vmem:[%s1956_s24 + $0x80] sm:$0xff]  ;;  %v413_v47 = vld [vmem:[%s1956_s24 + $0x90] sm:$0xff] }
  0x7a   : > { %553 = vmatpush1.bf16.msra.mxu0 %v495_v28  ;;  %v486_v40 = vmul.f32 %v454_v37, %v422_v35  ;;  %v419_v42 = vld [vmem:[%s1956_s24 + $0xc0] sm:$0xff]  ;;  %v421_v48 = vld [vmem:[%s1956_s24 + $0xd0] sm:$0xff]  ;;  %v400_v56 = vld [vmem:[%s1956_s24 + $0x28] sm:$0xff] }
  0x7b   : > { %v497_v38 = vpack.c.bf16 %v469_v29, %v461_v25  ;;  %v443_v43 = vld [vmem:[%s1963_s13 + $0x80] sm:$0xff]  ;;  %v504_v44 = vpack.c.bf16 %v484_v34, %v476_v33  ;;  %v445_v51 = vld [vmem:[%s1963_s13 + $0x90] sm:$0xff]  ;;  %v408_v58 = vld [vmem:[%s1956_s24 + $0x68] sm:$0xff] }
  0x7c   : > { %v451_v45 = vld [vmem:[%s1963_s13 + $0xc0] sm:$0xff]  ;;  %v475_v46 = vmul.f32 %v443_v43, %v411_v41  ;;  %v506_v49 = vpack.c.bf16 %v486_v40, %v478_v39  ;;  %v453_v52 = vld [vmem:[%s1963_s13 + $0xd0] sm:$0xff]  ;;  %v477_v53 = vmul.f32 %v445_v51, %v413_v47  ;;  %v432_v59 = vld [vmem:[%s1963_s13 + $0x28] sm:$0xff] }
  0x7d   : > { %606 = vmatpush1.bf16.msra.mxu1 %v497_v38  ;;  %v483_v50 = vmul.f32 %v451_v45, %v419_v42  ;;  %554 = vmatprep.subr.bf16.mxu0 %v504_v44  ;;  %v485_v54 = vmul.f32 %v453_v52, %v421_v48  ;;  %v2008_v55 = vld [vmem:[%s2315_s2] sm:$0xff]   ;;  %v440_v60 = vld [vmem:[%s1963_s13 + $0x68] sm:$0xff]  ;;  %v464_v62 = vmul.f32 %v432_v59, %v400_v56  ;;  %v402_v1 = vld [vmem:[%s1956_s24 + $0x38] sm:$0xff] }
  0x7e   : > { %607 = vmatprep.subr.bf16.mxu1 %v506_v49  ;;  %v472_v63 = vmul.f32 %v440_v60, %v408_v58  ;;  %v410_v2 = vld [vmem:[%s1956_s24 + $0x78] sm:$0xff]  ;;  %v399_v6 = vld [vmem:[%s1956_s24 + $0x20] sm:$0xff]  ;;  %v401_v12 = vld [vmem:[%s1956_s24 + $0x30] sm:$0xff] }
  0x7f   : > { %v503_v57 = vpack.c.bf16 %v483_v50, %v475_v46  ;;  %v505_v61 = vpack.c.bf16 %v485_v54, %v477_v53  ;;  %v434_v3 = vld [vmem:[%s1963_s13 + $0x38] sm:$0xff]  ;;  %v407_v7 = vld [vmem:[%s1956_s24 + $0x60] sm:$0xff]  ;;  %v409_v15 = vld [vmem:[%s1956_s24 + $0x70] sm:$0xff] }
  0x80   : > { %v442_v4 = vld [vmem:[%s1963_s13 + $0x78] sm:$0xff]  ;;  %v466_v5 = vmul.f32 %v434_v3, %v402_v1  ;;  %v500_v8 = vpack.c.bf16 %v472_v63, %v464_v62  ;;  %v431_v10 = vld [vmem:[%s1963_s13 + $0x20] sm:$0xff]  ;;  %v433_v16 = vld [vmem:[%s1963_s13 + $0x30] sm:$0xff] }
  0x81   : > { %555 = vmatpush1.bf16.msra.mxu0 %v503_v57  ;;  %608 = vmatpush1.bf16.msra.mxu1 %v505_v61  ;;  %v474_v9 = vmul.f32 %v442_v4, %v410_v2  ;;  %v439_v11 = vld [vmem:[%s1963_s13 + $0x60] sm:$0xff]  ;;  %v463_v13 = vmul.f32 %v431_v10, %v399_v6  ;;  %v441_v17 = vld [vmem:[%s1963_s13 + $0x70] sm:$0xff]  ;;  %v465_v19 = vmul.f32 %v433_v16, %v401_v12  ;;  %v416_v22 = vld [vmem:[%s1956_s24 + $0xa8] sm:$0xff] }
  0x82   : > { %v471_v14 = vmul.f32 %v439_v11, %v407_v7  ;;  %658 = vmatprep.subr.bf16.mxu0 %v500_v8  ;;  %v473_v20 = vmul.f32 %v441_v17, %v409_v15  ;;  %v424_v23 = vld [vmem:[%s1956_s24 + $0xe8] sm:$0xff]  ;;  %v418_v29 = vld [vmem:[%s1956_s24 + $0xb8] sm:$0xff]  ;;  %v415_v34 = vld [vmem:[%s1956_s24 + $0xa0] sm:$0xff] }
  0x83   : > { %v502_v18 = vpack.c.bf16 %v474_v9, %v466_v5  ;;  %v448_v24 = vld [vmem:[%s1963_s13 + $0xa8] sm:$0xff]  ;;  %v426_v30 = vld [vmem:[%s1956_s24 + $0xf8] sm:$0xff]  ;;  %v423_v37 = vld [vmem:[%s1956_s24 + $0xe0] sm:$0xff] }
  0x84   : > { %1483 = vmatmul.mubr.msk.bf16.vlgmr.msra.gmra.mrb[0].mxu0 %vm545_vm0, %v2008_v55  ;;  %1485 = vmatmul.mubr.msk.bf16.vlgmr.msra.gmra.mrb[0].mxu1 %vm545_vm0, %v2008_v55  ;;  %v499_v21 = vpack.c.bf16 %v471_v14, %v463_v13  ;;  %v501_v25 = vpack.c.bf16 %v473_v20, %v465_v19  ;;  %v1572_v26 = vld [vmem:[%s2315_s2 + $0x8] sm:$0xff]   ;;  %v480_v28 = vmul.f32 %v448_v24, %v416_v22  ;;  %v450_v32 = vld [vmem:[%s1963_s13 + $0xb8] sm:$0xff]  ;;  %v447_v38 = vld [vmem:[%s1963_s13 + $0xa0] sm:$0xff] }
  0x85   : > { %594 = vmatprep.mubr.bf16.mxu0 %v1741_v0  ;;  %711 = vmatprep.subr.bf16.mxu1 %v502_v18  ;;  %v456_v27 = vld [vmem:[%s1963_s13 + $0xe8] sm:$0xff]  ;;  %v458_v33 = vld [vmem:[%s1963_s13 + $0xf8] sm:$0xff]  ;;  %v482_v35 = vmul.f32 %v450_v32, %v418_v29  ;;  %v455_v39 = vld [vmem:[%s1963_s13 + $0xe0] sm:$0xff]  ;;  %v479_v41 = vmul.f32 %v447_v38, %v415_v34 }
  0x86   : > { %647 = vmatprep.mubr.bf16.mxu1 %v1741_v0  ;;  %659 = vmatpush1.bf16.msra.mxu0 %v499_v21  ;;  %v488_v31 = vmul.f32 %v456_v27, %v424_v23  ;;  %v490_v36 = vmul.f32 %v458_v33, %v426_v30  ;;  %v487_v42 = vmul.f32 %v455_v39, %v423_v37  ;;  %v417_v43 = vld [vmem:[%s1956_s24 + $0xb0] sm:$0xff]  ;;  %v511_v49 = vld [vmem:[%s2316_s3] sm:$0xff]  ;;  %v512_v52 = vld [vmem:[%s2316_s3 + $0x8] sm:$0xff] }
  0x87   : > { %712 = vmatpush1.bf16.msra.mxu1 %v501_v25  ;;  %v425_v44 = vld [vmem:[%s1956_s24 + $0xf0] sm:$0xff]  ;;  %517 = vperm.xlu0 %1569, %v511_v49   ;;  %v816_v56 = vld [vmem:[%s2318_s5] sm:$0xff]  ;;  %v514_v57 = vld [vmem:[%s2316_s3 + $0x18] sm:$0xff] }
  0x88   : > { %v508_v40 = vpack.c.bf16 %v488_v31, %v480_v28  ;;  %v449_v45 = vld [vmem:[%s1963_s13 + $0xb0] sm:$0xff]  ;;  %v510_v46 = vpack.c.bf16 %v490_v36, %v482_v35  ;;  %v507_v50 = vpack.c.bf16 %v487_v42, %v479_v41  ;;  %v817_v59 = vld [vmem:[%s2318_s5 + $0x8] sm:$0xff]  ;;  %v1100_v60 = vld [vmem:[%s2319_s6] sm:$0xff] }
  0x89   : > { %v457_v47 = vld [vmem:[%s1963_s13 + $0xf0] sm:$0xff]  ;;  %v481_v48 = vmul.f32 %v449_v45, %v417_v43  ;;  %v819_v61 = vld [vmem:[%s2318_s5 + $0x18] sm:$0xff]  ;;  %v1101_v62 = vld [vmem:[%s2319_s6 + $0x8] sm:$0xff] }
  0x8a   : > { %660 = vmatprep.subr.bf16.mxu0 %v508_v40  ;;  %v489_v51 = vmul.f32 %v457_v47, %v425_v44  ;;  %713 = vmatprep.subr.bf16.mxu1 %v510_v46  ;;  %v513_v54 = vld [vmem:[%s2316_s3 + $0x10] sm:$0xff]  ;;  %v1103_v63 = vld [vmem:[%s2319_s6 + $0x18] sm:$0xff] }
  0x8b   : > { %661 = vmatpush1.bf16.msra.mxu0 %v507_v50  ;;  %522 = vperm.xlu0 %1569, %v512_v52   ;;  %v818_v58 = vld [vmem:[%s2318_s5 + $0x10] sm:$0xff] }
  0x8c   : > { %1484 = vmatmul.mubr.msk.bf16.gmra.mrb[4].mxu0 %vm545_vm0, %v1572_v26  ;;  %1486 = vmatmul.mubr.msk.bf16.gmra.mrb[4].mxu1 %vm545_vm0, %v1572_v26  ;;  %v509_v53 = vpack.c.bf16 %v489_v51, %v481_v48 }
  0x8d   : > { %690 = vmatprep.mubr.bf16.mxu0 %v1741_v0  ;;  %743 = vmatprep.mubr.bf16.mxu1 %v1741_v0 }
  0x8e   : > { %714 = vmatpush1.bf16.msra.mxu1 %v509_v53  ;;  %527 = vperm.xlu1 %1570, %v513_v54  }
  0x8f   : > { %822 = vperm.xlu0 %1569, %v816_v56  }
  0x92   : > { %532 = vperm.xlu1 %1570, %v514_v57  }
  0x93   : > { %832 = vperm.xlu0 %1569, %v818_v58  }
  0x94   : > { %1487 = vmatmul.mubr.msk.bf16.vlgmr.msra.gmra.mrb[8].mxu0 %vm545_vm0, %v2008_v55  ;;  %1489 = vmatmul.mubr.msk.bf16.vlgmr.msra.gmra.mrb[8].mxu1 %vm545_vm0, %v2008_v55  ;;  %v1102_v55 = vld [vmem:[%s2319_s6 + $0x10] sm:$0xff] }
  0x95   : > { %700 = vmatprep.mubr.bf16.mxu0 %v1741_v0  ;;  %753 = vmatprep.mubr.bf16.mxu1 %v1741_v0 }
  0x96   : > { %827 = vperm.xlu1 %1570, %v817_v59  }
  0x97   : > { %1106 = vperm.xlu0 %1569, %v1100_v60  }
  0x9a   : > { %837 = vperm.xlu1 %1570, %v819_v61  }
  0x9b   : > { %1116 = vperm.xlu0 %1569, %v1102_v55  }
  0x9c   : > { %1488 = vmatmul.mubr.msk.bf16.gmra.mrb[12].mxu0 %vm545_vm0, %v1572_v26  ;;  %1490 = vmatmul.mubr.msk.bf16.gmra.mrb[12].mxu1 %vm545_vm0, %v1572_v26 }
  0x9d   : > { %888 = vmatprep.mubr.bf16.mxu0 %v1741_v0  ;;  %941 = vmatprep.mubr.bf16.mxu1 %v1741_v0 }
  0x9e   : > { %1111 = vperm.xlu1 %1570, %v1101_v62  }
  0xa2   : > { %1121 = vperm.xlu1 %1570, %v1103_v63  }
 0x106   : > { %v2101_v1 = vpop.permute.xlu0 %517 }
 0x10a   : > { %v2103_v2 = vpop.permute.xlu0 %522 }
 0x10d   : > { %v2105_v3 = vpop.permute.xlu1 %527 }
 0x111   : > { %v2115_v29 = vpop.permute.xlu1 %532 }
 0x157   : > { %v586_v4 = vpop.f32.mrb[0].mxu0  ;;  %v639_v6 = vpop.f32.mrb[0].mxu1 }
 0x158   : > { %v587_v5 = vadd.f32 %v586_v4, %v2101_v1  ;;  %v588_v7 = vpop.f32.mrb[1].mxu0  ;;  %v640_v8 = vadd.f32 %v639_v6, %v2101_v1  ;;  %v641_v10 = vpop.f32.mrb[1].mxu1 }
 0x159   : > { %v589_v9 = vadd.f32 %v588_v7, %v2101_v1  ;;  %v590_v11 = vpop.f32.mrb[2].mxu0  ;;  %v642_v12 = vadd.f32 %v641_v10, %v2101_v1  ;;  %v643_v14 = vpop.f32.mrb[2].mxu1 }
 0x15a   : > { %v591_v13 = vadd.f32 %v590_v11, %v2103_v2  ;;  %v592_v15 = vpop.f32.mrb[3].mxu0  ;;  %v644_v16 = vadd.f32 %v643_v14, %v2103_v2  ;;  %v645_v18 = vpop.f32.mrb[3].mxu1  ;;  %v764_v19 = vmax.f32 %v587_v5, 0.0  ;;  %v766_v22 = vmax.f32 %v640_v8, 0.0 }
 0x15b   : > { %v593_v17 = vadd.f32 %v592_v15, %v2103_v2  ;;  %v646_v21 = vadd.f32 %v645_v18, %v2103_v2  ;;  %v765_v23 = vmax.f32 %v589_v9, 0.0  ;;  %v767_v26 = vmax.f32 %v642_v12, 0.0  ;;  %v2131_v9 = vld [vmem:[%s2317_s4] sm:$0xff]  }
 0x15c   : > { %v772_v20 = vmax.f32 %v591_v13, 0.0  ;;  %v774_v24 = vmax.f32 %v644_v16, 0.0 }
 0x15d   : > { %v773_v25 = vmax.f32 %v593_v17, 0.0  ;;  %v775_v28 = vmax.f32 %v646_v21, 0.0 }
 0x15e   : > { %v800_v27 = vpack.c.bf16 %v772_v20, %v764_v19  ;;  %v802_v30 = vpack.c.bf16 %v774_v24, %v766_v22 }
 0x15f   : > { %v801_v31 = vpack.c.bf16 %v773_v25, %v765_v23  ;;  %v596_v32 = vpop.f32.mrb[4].mxu0  ;;  %v803_v33 = vpack.c.bf16 %v775_v28, %v767_v26  ;;  %v649_v35 = vpop.f32.mrb[4].mxu1 }
 0x160   : > { %v597_v34 = vadd.f32 %v596_v32, %v2105_v3  ;;  %v598_v36 = vpop.f32.mrb[5].mxu0  ;;  %v650_v37 = vadd.f32 %v649_v35, %v2105_v3  ;;  %v651_v39 = vpop.f32.mrb[5].mxu1 }
 0x161   : > { %v599_v38 = vadd.f32 %v598_v36, %v2105_v3  ;;  %v600_v40 = vpop.f32.mrb[6].mxu0  ;;  %856 = vmatprep.subr.bf16.mxu0 %v801_v31  ;;  %v652_v41 = vadd.f32 %v651_v39, %v2105_v3  ;;  %v653_v43 = vpop.f32.mrb[6].mxu1  ;;  %909 = vmatprep.subr.bf16.mxu1 %v803_v33 }
 0x162   : > { %v601_v42 = vadd.f32 %v600_v40, %v2115_v29  ;;  %v602_v44 = vpop.f32.mrb[7].mxu0  ;;  %857 = vmatpush1.bf16.msra.mxu0 %v800_v27  ;;  %v654_v45 = vadd.f32 %v653_v43, %v2115_v29  ;;  %v655_v47 = vpop.f32.mrb[7].mxu1  ;;  %910 = vmatpush1.bf16.msra.mxu1 %v802_v30  ;;  %v780_v48 = vmax.f32 %v597_v34, 0.0  ;;  %v782_v51 = vmax.f32 %v650_v37, 0.0  ;;  %v1574_v37 = vld [vmem:[%s2317_s4 + $0x8] sm:$0xff]  }
 0x163   : > { %v603_v46 = vadd.f32 %v602_v44, %v2115_v29  ;;  %v656_v50 = vadd.f32 %v655_v47, %v2115_v29  ;;  %v781_v52 = vmax.f32 %v599_v38, 0.0  ;;  %v783_v56 = vmax.f32 %v652_v41, 0.0 }
 0x164   : > { %v788_v49 = vmax.f32 %v601_v42, 0.0  ;;  %v790_v53 = vmax.f32 %v654_v45, 0.0 }
 0x165   : > { %v789_v54 = vmax.f32 %v603_v46, 0.0  ;;  %v791_v58 = vmax.f32 %v656_v50, 0.0 }
 0x166   : > { %v808_v57 = vpack.c.bf16 %v788_v49, %v780_v48  ;;  %v810_v59 = vpack.c.bf16 %v790_v53, %v782_v51 }
 0x167   : > { %v809_v60 = vpack.c.bf16 %v789_v54, %v781_v52  ;;  %v692_v61 = vpop.f32.mrb[8].mxu0  ;;  %v811_v55 = vpack.c.bf16 %v791_v58, %v783_v56  ;;  %v745_v63 = vpop.f32.mrb[8].mxu1 }
 0x168   : > { %v693_v62 = vadd.f32 %v692_v61, %v2101_v1  ;;  %v694_v4 = vpop.f32.mrb[9].mxu0  ;;  %v746_v5 = vadd.f32 %v745_v63, %v2101_v1  ;;  %v747_v7 = vpop.f32.mrb[9].mxu1 }
 0x169   : > { %v695_v6 = vadd.f32 %v694_v4, %v2101_v1  ;;  %v696_v8 = vpop.f32.mrb[10].mxu0  ;;  %858 = vmatprep.subr.bf16.mxu0 %v809_v60  ;;  %v748_v10 = vadd.f32 %v747_v7, %v2101_v1  ;;  %v749_v12 = vpop.f32.mrb[10].mxu1  ;;  %911 = vmatprep.subr.bf16.mxu1 %v811_v55 }
 0x16a   : > { %v697_v11 = vadd.f32 %v696_v8, %v2103_v2  ;;  %v698_v13 = vpop.f32.mrb[11].mxu0  ;;  %859 = vmatpush1.bf16.msra.mxu0 %v808_v57  ;;  %v750_v14 = vadd.f32 %v749_v12, %v2103_v2  ;;  %v751_v16 = vpop.f32.mrb[11].mxu1  ;;  %912 = vmatpush1.bf16.msra.mxu1 %v810_v59  ;;  %v768_v17 = vmax.f32 %v693_v62, 0.0  ;;  %v770_v20 = vmax.f32 %v746_v5, 0.0 }
 0x16b   : > { %v699_v15 = vadd.f32 %v698_v13, %v2103_v2  ;;  %v752_v19 = vadd.f32 %v751_v16, %v2103_v2  ;;  %v769_v21 = vmax.f32 %v695_v6, 0.0  ;;  %v771_v23 = vmax.f32 %v748_v10, 0.0  ;;  %v2169_v58 = vpop.permute.xlu1 %827 }
 0x16c   : > { %v776_v18 = vmax.f32 %v697_v11, 0.0  ;;  %v778_v22 = vmax.f32 %v750_v14, 0.0 }
 0x16d   : > { %v777_v1 = vmax.f32 %v699_v15, 0.0  ;;  %1493 = vmatmul.mubr.msk.bf16.vlgmr.msra.gmra.mrb[16].mxu0 %vm545_vm0, %v2131_v9  ;;  %v779_v25 = vmax.f32 %v752_v19, 0.0  ;;  %1495 = vmatmul.mubr.msk.bf16.vlgmr.msra.gmra.mrb[16].mxu1 %vm545_vm0, %v2131_v9 }
 0x16e   : > { %v804_v24 = vpack.c.bf16 %v776_v18, %v768_v17  ;;  %898 = vmatprep.mubr.bf16.mxu0 %v1741_v0  ;;  %v806_v26 = vpack.c.bf16 %v778_v22, %v770_v20  ;;  %951 = vmatprep.mubr.bf16.mxu1 %v1741_v0 }
 0x16f   : > { %v805_v27 = vpack.c.bf16 %v777_v1, %v769_v21  ;;  %v702_v28 = vpop.f32.mrb[12].mxu0  ;;  %v807_v2 = vpack.c.bf16 %v779_v25, %v771_v23  ;;  %v755_v31 = vpop.f32.mrb[12].mxu1 }
 0x170   : > { %v703_v30 = vadd.f32 %v702_v28, %v2105_v3  ;;  %v704_v32 = vpop.f32.mrb[13].mxu0  ;;  %v756_v33 = vadd.f32 %v755_v31, %v2105_v3  ;;  %v757_v35 = vpop.f32.mrb[13].mxu1 }
 0x171   : > { %v705_v34 = vadd.f32 %v704_v32, %v2105_v3  ;;  %v706_v36 = vpop.f32.mrb[14].mxu0  ;;  %962 = vmatprep.subr.bf16.mxu0 %v805_v27  ;;  %v758_v38 = vadd.f32 %v757_v35, %v2105_v3  ;;  %v759_v40 = vpop.f32.mrb[14].mxu1  ;;  %1015 = vmatprep.subr.bf16.mxu1 %v807_v2 }
 0x172   : > { %v707_v39 = vadd.f32 %v706_v36, %v2115_v29  ;;  %v708_v41 = vpop.f32.mrb[15].mxu0  ;;  %963 = vmatpush1.bf16.msra.mxu0 %v804_v24  ;;  %v760_v42 = vadd.f32 %v759_v40, %v2115_v29  ;;  %v761_v44 = vpop.f32.mrb[15].mxu1  ;;  %1016 = vmatpush1.bf16.msra.mxu1 %v806_v26  ;;  %v784_v45 = vmax.f32 %v703_v30, 0.0  ;;  %v786_v48 = vmax.f32 %v756_v33, 0.0 }
 0x173   : > { %v709_v43 = vadd.f32 %v708_v41, %v2115_v29  ;;  %v762_v47 = vadd.f32 %v761_v44, %v2115_v29  ;;  %v785_v49 = vmax.f32 %v705_v34, 0.0  ;;  %v787_v51 = vmax.f32 %v758_v38, 0.0  ;;  %v2167_v29 = vpop.permute.xlu0 %822  ;;  %v2173_v60 = vpop.permute.xlu1 %837 }
 0x174   : > { %v792_v46 = vmax.f32 %v707_v39, 0.0  ;;  %v794_v50 = vmax.f32 %v760_v42, 0.0  ;;  %v2189_v26 = vstv %s1228_s20 }
 0x175   : > { %v793_v3 = vmax.f32 %v709_v43, 0.0  ;;  %1494 = vmatmul.mubr.msk.bf16.gmra.mrb[20].mxu0 %vm545_vm0, %v1574_v37  ;;  %v795_v53 = vmax.f32 %v762_v47, 0.0  ;;  %1496 = vmatmul.mubr.msk.bf16.gmra.mrb[20].mxu1 %vm545_vm0, %v1574_v37 }
 0x176   : > { %v812_v52 = vpack.c.bf16 %v792_v46, %v784_v45  ;;  %994 = vmatprep.mubr.bf16.mxu0 %v1741_v0  ;;  %v814_v54 = vpack.c.bf16 %v794_v50, %v786_v48  ;;  %1047 = vmatprep.mubr.bf16.mxu1 %v1741_v0 }
 0x177   : > { %v813_v56 = vpack.c.bf16 %v793_v3, %v785_v49  ;;  %v815_v57 = vpack.c.bf16 %v795_v53, %v787_v51  ;;  %v2171_v59 = vpop.permute.xlu0 %832  ;;  %v2185_v21 = vpop.permute.xlu1 %1111 }
 0x179   : > { %964 = vmatprep.subr.bf16.mxu0 %v813_v56  ;;  %1017 = vmatprep.subr.bf16.mxu1 %v815_v57 }
 0x17a   : > { %965 = vmatpush1.bf16.msra.mxu0 %v812_v52  ;;  %1018 = vmatpush1.bf16.msra.mxu1 %v814_v54 }
 0x17b   : > { %v2183_v20 = vpop.permute.xlu0 %1106 }
 0x17d   : > { %1497 = vmatmul.mubr.msk.bf16.vlgmr.msra.gmra.mrb[24].mxu0 %vm545_vm0, %v2131_v9  ;;  %1499 = vmatmul.mubr.msk.bf16.vlgmr.msra.gmra.mrb[24].mxu1 %vm545_vm0, %v2131_v9 }
 0x17e   : > { %1004 = vmatprep.mubr.bf16.mxu0 %v1741_v0  ;;  %1057 = vmatprep.mubr.bf16.mxu1 %v1741_v0 }
 0x17f   : > { %v2202_v50 = vpop.permute.xlu0 %1116 }
 0x185   : > { %1498 = vmatmul.mubr.msk.bf16.gmra.mrb[28].mxu0 %vm545_vm0, %v1574_v37  ;;  %1500 = vmatmul.mubr.msk.bf16.gmra.mrb[28].mxu1 %vm545_vm0, %v1574_v37 }
 0x240   : > { %v890_v61 = vpop.f32.mrb[16].mxu0  ;;  %v943_v62 = vpop.f32.mrb[16].mxu1 }
 0x241   : > { %v891_v55 = vadd.f32 %v890_v61, %v2167_v29  ;;  %v892_v63 = vpop.f32.mrb[17].mxu0  ;;  %v944_v0 = vadd.f32 %v943_v62, %v2167_v29  ;;  %v945_v5 = vpop.f32.mrb[17].mxu1 }
 0x242   : > { %v893_v4 = vadd.f32 %v892_v63, %v2167_v29  ;;  %v894_v6 = vpop.f32.mrb[18].mxu0  ;;  %v946_v8 = vadd.f32 %v945_v5, %v2167_v29  ;;  %v947_v10 = vpop.f32.mrb[18].mxu1 }
 0x243   : > { %v1068_v7 = vmax.f32 %v891_v55, 0.0  ;;  %v895_v9 = vadd.f32 %v894_v6, %v2169_v58  ;;  %v896_v11 = vpop.f32.mrb[19].mxu0  ;;  %v1070_v12 = vmax.f32 %v944_v0, 0.0  ;;  %v948_v14 = vadd.f32 %v947_v10, %v2169_v58  ;;  %v949_v16 = vpop.f32.mrb[19].mxu1 }
 0x244   : > { %v1069_v13 = vmax.f32 %v893_v4, 0.0  ;;  %v897_v15 = vadd.f32 %v896_v11, %v2169_v58  ;;  %v1071_v17 = vmax.f32 %v946_v8, 0.0  ;;  %v950_v19 = vadd.f32 %v949_v16, %v2169_v58  ;;  %v2208_v62 = vpop.permute.xlu1 %1121 }
 0x245   : > { %v1076_v18 = vmax.f32 %v895_v9, 0.0  ;;  %v1078_v22 = vmax.f32 %v948_v14, 0.0  ;;  %v1124_v23 = vmul.f32 %v2183_v20, %v1068_v7  ;;  %v1126_v27 = vmul.f32 %v2183_v20, %v1070_v12 }
 0x246   : > { %v1077_v1 = vmax.f32 %v897_v15, 0.0  ;;  %v1079_v25 = vmax.f32 %v950_v19, 0.0  ;;  %v1125_v28 = vmul.f32 %v2183_v20, %v1069_v13  ;;  %v1127_v32 = vmul.f32 %v2183_v20, %v1071_v17 }
 0x247   : > { %v1132_v24 = vmul.f32 %v2185_v21, %v1076_v18  ;;  %v1134_v2 = vmul.f32 %v2185_v21, %v1078_v22 }
 0x248   : > { %v1133_v30 = vmul.f32 %v2185_v21, %v1077_v1  ;;  %v900_v31 = vpop.f32.mrb[20].mxu0  ;;  %v1135_v34 = vmul.f32 %v2185_v21, %v1079_v25  ;;  %v953_v36 = vpop.f32.mrb[20].mxu1 }
 0x249   : > { %v1156_v33 = vadd.f32 %v1132_v24, %v1124_v23  ;;  %v901_v35 = vadd.f32 %v900_v31, %v2171_v59  ;;  %v902_v37 = vpop.f32.mrb[21].mxu0  ;;  %v1174_v38 = vadd.f32 %v1134_v2, %v1126_v27  ;;  %v954_v40 = vadd.f32 %v953_v36, %v2171_v59  ;;  %v955_v42 = vpop.f32.mrb[21].mxu1 }
 0x24a   : > { %v1165_v39 = vadd.f32 %v1133_v30, %v1125_v28  ;;  %v903_v41 = vadd.f32 %v902_v37, %v2171_v59  ;;  %v904_v43 = vpop.f32.mrb[22].mxu0  ;;  %v1183_v44 = vadd.f32 %v1135_v34, %v1127_v32  ;;  %v956_v46 = vadd.f32 %v955_v42, %v2171_v59  ;;  %v957_v48 = vpop.f32.mrb[22].mxu1 }
 0x24b   : > { %v1084_v45 = vmax.f32 %v901_v35, 0.0  ;;  %v905_v47 = vadd.f32 %v904_v43, %v2173_v60  ;;  %v906_v49 = vpop.f32.mrb[23].mxu0  ;;  %v1086_v3 = vmax.f32 %v954_v40, 0.0  ;;  %v958_v52 = vadd.f32 %v957_v48, %v2173_v60  ;;  %v959_v54 = vpop.f32.mrb[23].mxu1 }
 0x24c   : > { %v1085_v51 = vmax.f32 %v903_v41, 0.0  ;;  %v907_v53 = vadd.f32 %v906_v49, %v2173_v60  ;;  %v1087_v57 = vmax.f32 %v956_v46, 0.0  ;;  %v960_v55 = vadd.f32 %v959_v54, %v2173_v60 }
 0x24d   : > { %v1140_v56 = vmul.f32 %v2202_v50, %v1084_v45  ;;  %v1092_v61 = vmax.f32 %v905_v47, 0.0  ;;  %v1142_v63 = vmul.f32 %v2202_v50, %v1086_v3  ;;  %v1094_v4 = vmax.f32 %v958_v52, 0.0 }
 0x24e   : > { %v1141_v0 = vmul.f32 %v2202_v50, %v1085_v51  ;;  %v1093_v5 = vmax.f32 %v907_v53, 0.0  ;;  %v1143_v7 = vmul.f32 %v2202_v50, %v1087_v57  ;;  %v1095_v9 = vmax.f32 %v960_v55, 0.0 }
 0x24f   : > { %v1157_v6 = vadd.f32 %v1156_v33, %v1140_v56  ;;  %v1148_v8 = vmul.f32 %v2208_v62, %v1092_v61  ;;  %v1175_v10 = vadd.f32 %v1174_v38, %v1142_v63  ;;  %v1150_v12 = vmul.f32 %v2208_v62, %v1094_v4 }
 0x250   : > { %v1166_v11 = vadd.f32 %v1165_v39, %v1141_v0  ;;  %v1149_v13 = vmul.f32 %v2208_v62, %v1093_v5  ;;  %v996_v14 = vpop.f32.mrb[24].mxu0  ;;  %v1184_v15 = vadd.f32 %v1183_v44, %v1143_v7  ;;  %v1151_v17 = vmul.f32 %v2208_v62, %v1095_v9  ;;  %v1049_v19 = vpop.f32.mrb[24].mxu1 }
 0x251   : > { %v1158_v16 = vadd.f32 %v1157_v6, %v1148_v8  ;;  %v997_v18 = vadd.f32 %v996_v14, %v2167_v29  ;;  %v998_v22 = vpop.f32.mrb[25].mxu0  ;;  %v1176_v1 = vadd.f32 %v1175_v10, %v1150_v12  ;;  %v1050_v24 = vadd.f32 %v1049_v19, %v2167_v29  ;;  %v1051_v27 = vpop.f32.mrb[25].mxu1 }
 0x252   : > { %v1167_v23 = vadd.f32 %v1166_v11, %v1149_v13  ;;  %v999_v25 = vadd.f32 %v998_v22, %v2167_v29  ;;  %v1000_v28 = vpop.f32.mrb[26].mxu0  ;;  %v1185_v30 = vadd.f32 %v1184_v15, %v1151_v17  ;;  %v1052_v32 = vadd.f32 %v1051_v27, %v2167_v29  ;;  %v1053_v33 = vpop.f32.mrb[26].mxu1 }
 0x253   : > { %v1159_v2 = vrot.slane %v1158_v16, 4  ;;  %v1072_v31 = vmax.f32 %v997_v18, 0.0  ;;  %v1002_v34 = vpop.f32.mrb[27].mxu0  ;;  %v1177_v35 = vrot.slane %v1176_v1, 4  ;;  %v1074_v37 = vmax.f32 %v1050_v24, 0.0  ;;  %v1055_v39 = vpop.f32.mrb[27].mxu1 }
 0x254   : > { %v1168_v36 = vrot.slane %v1167_v23, 4  ;;  %v1073_v38 = vmax.f32 %v999_v25, 0.0  ;;  %v1186_v41 = vrot.slane %v1185_v30, 4  ;;  %v1075_v43 = vmax.f32 %v1052_v32, 0.0 }
 0x255   : > { %v1160_v40 = vadd.f32 %v1159_v2, %v1158_v16  ;;  %v1128_v42 = vmul.f32 %v2183_v20, %v1072_v31  ;;  %v1178_v44 = vadd.f32 %v1177_v35, %v1176_v1  ;;  %v1130_v46 = vmul.f32 %v2183_v20, %v1074_v37 }
 0x256   : > { %v1169_v45 = vadd.f32 %v1168_v36, %v1167_v23  ;;  %v1129_v47 = vmul.f32 %v2183_v20, %v1073_v38  ;;  %v1187_v29 = vadd.f32 %v1186_v41, %v1185_v30  ;;  %v1131_v49 = vmul.f32 %v2183_v20, %v1075_v43 }
 0x257   : > { %v1161_v48 = vrot.slane %v1160_v40, 2  ;;  %v1001_v3 = vadd.f32 %v1000_v28, %v2169_v58  ;;  %v1179_v51 = vrot.slane %v1178_v44, 2  ;;  %v1054_v53 = vadd.f32 %v1053_v33, %v2169_v58 }
 0x258   : > { %v1170_v52 = vrot.slane %v1169_v45, 2  ;;  %v1003_v54 = vadd.f32 %v1002_v34, %v2169_v58  ;;  %v1006_v56 = vpop.f32.mrb[28].mxu0  ;;  %v1188_v61 = vrot.slane %v1187_v29, 2  ;;  %v1056_v63 = vadd.f32 %v1055_v39, %v2169_v58  ;;  %v1059_v0 = vpop.f32.mrb[28].mxu1 }
 0x259   : > { %v1162_v57 = vadd.f32 %v1161_v48, %v1160_v40  ;;  %v1080_v55 = vmax.f32 %v1001_v3, 0.0  ;;  %v1008_v4 = vpop.f32.mrb[29].mxu0  ;;  %v1180_v5 = vadd.f32 %v1179_v51, %v1178_v44  ;;  %v1082_v7 = vmax.f32 %v1054_v53, 0.0  ;;  %v1061_v8 = vpop.f32.mrb[29].mxu1 }
 0x25a   : > { %v1171_v6 = vadd.f32 %v1170_v52, %v1169_v45  ;;  %v1081_v20 = vmax.f32 %v1003_v54, 0.0  ;;  %v1010_v9 = vpop.f32.mrb[30].mxu0  ;;  %v1189_v11 = vadd.f32 %v1188_v61, %v1187_v29  ;;  %v1083_v13 = vmax.f32 %v1056_v63, 0.0  ;;  %v1063_v14 = vpop.f32.mrb[30].mxu1 }
 0x25b   : > { %v1163_v10 = vrot.slane %v1162_v57, 1  ;;  %v1136_v12 = vmul.f32 %v2185_v21, %v1080_v55  ;;  %v1012_v15 = vpop.f32.mrb[31].mxu0  ;;  %v1181_v16 = vrot.slane %v1180_v5, 1  ;;  %v1138_v18 = vmul.f32 %v2185_v21, %v1082_v7  ;;  %v1065_v19 = vpop.f32.mrb[31].mxu1 }
 0x25c   : > { %v1172_v17 = vrot.slane %v1171_v6, 1  ;;  %v1137_v58 = vmul.f32 %v2185_v21, %v1081_v20  ;;  %v1190_v1 = vrot.slane %v1189_v11, 1  ;;  %v1139_v24 = vmul.f32 %v2185_v21, %v1083_v13 }
 0x25d   : > { %v1164_v22 = vadd.f32 %v1163_v10, %v1162_v57  ;;  %v1192_v23 = vadd.f32 %v1136_v12, %v1128_v42  ;;  %v1182_v25 = vadd.f32 %v1181_v16, %v1180_v5  ;;  %v1210_v28 = vadd.f32 %v1138_v18, %v1130_v46 }
 0x25e   : > { %v1173_v27 = vadd.f32 %v1172_v17, %v1171_v6  ;;  %v1201_v2 = vadd.f32 %v1137_v58, %v1129_v47  ;;  %v1191_v31 = vadd.f32 %v1190_v1, %v1189_v11  ;;  %v1219_v32 = vadd.f32 %v1139_v24, %v1131_v49 }
 0x25f   : > { %v1230_v30 = vadd.f32 %v2189_v26, %v1164_v22  ;;  %v1007_v33 = vadd.f32 %v1006_v56, %v2171_v59  ;;  %v1232_v34 = vadd.f32 %v2189_v26, %v1182_v25  ;;  %v1060_v36 = vadd.f32 %v1059_v0, %v2171_v59 }
 0x260   : > { %v1231_v35 = vadd.f32 %v2189_v26, %v1173_v27  ;;  %v1009_v37 = vadd.f32 %v1008_v4, %v2171_v59  ;;  %v1233_v21 = vadd.f32 %v2189_v26, %v1191_v31  ;;  %v1062_v40 = vadd.f32 %v1061_v8, %v2171_v59 }
 0x261   : > { %v1501_v38 = vmul.f32 -1.442695, %v1230_v30  ;;  %v1088_v39 = vmax.f32 %v1007_v33, 0.0  ;;  %v1503_v41 = vmul.f32 -1.442695, %v1232_v34  ;;  %v1090_v43 = vmax.f32 %v1060_v36, 0.0 }
 0x262   : > { %v1502_v42 = vmul.f32 -1.442695, %v1231_v35  ;;  %v1089_v44 = vmax.f32 %v1009_v37, 0.0  ;;  %v1504_v45 = vmul.f32 -1.442695, %v1233_v21  ;;  %v1091_v47 = vmax.f32 %v1062_v40, 0.0 }
 0x263   : > { %1575 = vpow2.f32 %v1501_v38  ;;  %v1144_v46 = vmul.f32 %v2202_v50, %v1088_v39  ;;  %v1146_v48 = vmul.f32 %v2202_v50, %v1090_v43  ;;  %v1011_v49 = vadd.f32 %v1010_v9, %v2173_v60 }
 0x264   : > { %1577 = vpow2.f32 %v1503_v41  ;;  %v1145_v29 = vmul.f32 %v2202_v50, %v1089_v44  ;;  %v1147_v59 = vmul.f32 %v2202_v50, %v1091_v47  ;;  %v1064_v51 = vadd.f32 %v1063_v14, %v2173_v60 }
 0x265   : > { %1579 = vpow2.f32 %v1502_v42  ;;  %v1193_v3 = vadd.f32 %v1192_v23, %v1144_v46  ;;  %v1211_v52 = vadd.f32 %v1210_v28, %v1146_v48  ;;  %v1096_v54 = vmax.f32 %v1011_v49, 0.0 }
 0x266   : > { %1581 = vpow2.f32 %v1504_v45  ;;  %v1202_v53 = vadd.f32 %v1201_v2, %v1145_v29  ;;  %v1220_v56 = vadd.f32 %v1219_v32, %v1147_v59  ;;  %v1098_v57 = vmax.f32 %v1064_v51, 0.0 }
 0x267   : > { %v1013_v61 = vadd.f32 %v1012_v15, %v2173_v60  ;;  %v1066_v55 = vadd.f32 %v1065_v19, %v2173_v60  ;;  %v1152_v63 = vmul.f32 %v2208_v62, %v1096_v54  ;;  %v1742_v25 = vmov 1966171168  }
 0x268   : > { %v1154_v0 = vmul.f32 %v2208_v62, %v1098_v57  ;;  %v1299_v27 = vunpack.c.l.s4 %v1742_v25  ;;  %v1301_v30 = vlaneseq }
 0x269   : > { %v1097_v4 = vmax.f32 %v1013_v61, 0.0  ;;  %v1099_v5 = vmax.f32 %v1066_v55, 0.0  ;;  %v1194_v6 = vadd.f32 %v1193_v3, %v1152_v63 }
 0x26a   : > { %v1212_v50 = vadd.f32 %v1211_v52, %v1154_v0  ;;  %v1300_v21 = vunpack.c.0.s8 %v1299_v27  ;;  %v1302_v39 = vshrl.u32 %v1301_v30, 7 }
 0x26b   : > { %v1153_v7 = vmul.f32 %v2208_v62, %v1097_v4  ;;  %v1155_v20 = vmul.f32 %v2208_v62, %v1099_v5  ;;  %v1195_v8 = vrot.slane %v1194_v6, 4 }
 0x26c   : > { %v1213_v10 = vrot.slane %v1212_v50, 4  ;;  %v1303_v49 = vsub.s32 %v1300_v21, %v1302_v39 }
 0x26d   : > { %v1576_v9 = vpop.eup %1575  ;;  %v1203_v11 = vadd.f32 %v1202_v53, %v1153_v7  ;;  %v1221_v12 = vadd.f32 %v1220_v56, %v1155_v20  ;;  %v1196_v60 = vadd.f32 %v1195_v8, %v1194_v6 }
 0x26e   : > { %v1578_v13 = vpop.eup %1577  ;;  %v1262_v14 = vadd.f32 1.0, %v1576_v9  ;;  %v1214_v17 = vadd.f32 %v1213_v10, %v1212_v50 }
 0x26f   : > { %v1580_v15 = vpop.eup %1579  ;;  %v1264_v16 = vadd.f32 1.0, %v1578_v13  ;;  %v1204_v18 = vrot.slane %v1203_v11, 4  ;;  %v1222_v58 = vrot.slane %v1221_v12, 4  ;;  %v1197_v1 = vrot.slane %v1196_v60, 2 }
 0x270   : > { %v1582_v19 = vpop.eup %1581  ;;  %1583 = vrcp.f32 %v1262_v14  ;;  %v1263_v22 = vadd.f32 1.0, %v1580_v15  ;;  %v1215_v62 = vrot.slane %v1214_v17, 2 }
 0x271   : > { %1585 = vrcp.f32 %v1264_v16  ;;  %v1265_v23 = vadd.f32 1.0, %v1582_v19  ;;  %v1205_v24 = vadd.f32 %v1204_v18, %v1203_v11  ;;  %v1198_v28 = vadd.f32 %v1197_v1, %v1196_v60 }
 0x272   : > { %1587 = vrcp.f32 %v1263_v22  ;;  %v1223_v2 = vadd.f32 %v1222_v58, %v1221_v12  ;;  %v1216_v31 = vadd.f32 %v1215_v62, %v1214_v17 }
 0x273   : > { %1589 = vrcp.f32 %v1265_v23  ;;  %v1206_v32 = vrot.slane %v1205_v24, 2  ;;  %v1199_v33 = vrot.slane %v1198_v28, 1 }
 0x274   : > { %v1224_v34 = vrot.slane %v1223_v2, 2  ;;  %v1217_v35 = vrot.slane %v1216_v31, 1 }
 0x275   : > { %v1207_v36 = vadd.f32 %v1206_v32, %v1205_v24  ;;  %v1200_v37 = vadd.f32 %v1199_v33, %v1198_v28 }
 0x276   : > { %v1225_v38 = vadd.f32 %v1224_v34, %v1223_v2  ;;  %v1218_v40 = vadd.f32 %v1217_v35, %v1216_v31 }
 0x277   : > { %v1208_v41 = vrot.slane %v1207_v36, 1  ;;  %v1234_v42 = vadd.f32 %v2189_v26, %v1200_v37 }
 0x278   : > { %v1226_v43 = vrot.slane %v1225_v38, 1  ;;  %v1236_v44 = vadd.f32 %v2189_v26, %v1218_v40 }
 0x279   : > { %v1209_v45 = vadd.f32 %v1208_v41, %v1207_v36  ;;  %v1505_v47 = vmul.f32 -1.442695, %v1234_v42 }
 0x27a   : > { %v1584_v46 = vpop.eup %1583  ;;  %v1227_v48 = vadd.f32 %v1226_v43, %v1225_v38  ;;  %v1507_v3 = vmul.f32 -1.442695, %v1236_v44 }
 0x27b   : > { %v1586_v29 = vpop.eup %1585  ;;  %v1235_v59 = vadd.f32 %v2189_v26, %v1209_v45  ;;  %1591 = vpow2.f32 %v1505_v47 }
 0x27c   : > { %v1588_v51 = vpop.eup %1587  ;;  %v1237_v52 = vadd.f32 %v2189_v26, %v1227_v48  ;;  %1593 = vpow2.f32 %v1507_v3 }
 0x27d   : > { %v1590_v53 = vpop.eup %1589  ;;  %v1294_v54 = vcombine.low %v1584_v46, %v1588_v51  ;;  %v1506_v56 = vmul.f32 -1.442695, %v1235_v59 }
 0x27e   : > { %v1295_v57 = vcombine.low %v1586_v29, %v1590_v53  ;;  %v1508_v61 = vmul.f32 -1.442695, %v1237_v52 }
 0x27f   : > { %v1304_v55 = vrot.slane %v1294_v54, %v1303_v49  ;;  %1595 = vpow2.f32 %v1506_v56 }
 0x280   : > { %v1311_v63 = vrot.slane %v1295_v57, %v1303_v49  ;;  %1597 = vpow2.f32 %v1508_v61 }
 0x282   : > { %v1326_v0 = vcombine.low %v1304_v55, %v1311_v63 }
 0x284   : > { %v1334_v17 = vrot.slane %v1326_v0, %v1303_v49 }
 0x285   : > { %v1592_v4 = vpop.eup %1591 }
 0x286   : > { %v1594_v5 = vpop.eup %1593  ;;  %v1266_v6 = vadd.f32 1.0, %v1592_v4 }
 0x287   : > { %v1268_v50 = vadd.f32 1.0, %v1594_v5 }
 0x288   : > { %1599 = vrcp.f32 %v1266_v6 }
 0x289   : > { %v1596_v7 = vpop.eup %1595  ;;  %1601 = vrcp.f32 %v1268_v50 }
 0x28a   : > { %v1598_v20 = vpop.eup %1597  ;;  %v1267_v26 = vadd.f32 1.0, %v1596_v7 }
 0x28b   : > { %v1269_v8 = vadd.f32 1.0, %v1598_v20 }
 0x28c   : > { %1603 = vrcp.f32 %v1267_v26 }
 0x28d   : > { %1605 = vrcp.f32 %v1269_v8 }
 0x292   : > { %v1600_v9 = vpop.eup %1599 }
 0x293   : > { %v1602_v10 = vpop.eup %1601 }
 0x296   : > { %v1604_v11 = vpop.eup %1603 }
 0x297   : > { %v1606_v12 = vpop.eup %1605  ;;  %v1296_v13 = vcombine.low %v1600_v9, %v1604_v11 }
 0x298   : > { %v1297_v14 = vcombine.low %v1602_v10, %v1606_v12 }
 0x299   : > { %v1318_v60 = vrot.slane %v1296_v13, %v1303_v49 }
 0x29a   : > { %v1325_v15 = vrot.slane %v1297_v14, %v1303_v49 }
 0x29c   : > { %v1327_v16 = vcombine.low %v1318_v60, %v1325_v15  ;;  %1352 = sbr.rel (!%p2330_p6) target bundleno = 702 (0x2be), region = 64 }
 0x29e   : > { %v1341_v18 = vrot.slane %v1327_v16, %v1303_v49 }
 0x2a0   : > { %v1342_v58 = vcombine.low %v1334_v17, %v1341_v18 }
 0x2a2   : > { %1344 = vst [vmem:[%s378_s12] sm:$0xff] %v1342_v58 }
 0x2a3   : > { %s2342_s11 = smov (!%p1355_p5, %s1354_s11), 8 }
 0x2a4   : > { %s2262_s22 = sshll.u32 %s2342_s11, 4 }
 0x2a5   : > { %s1359_s28 = ssub.s32 128, %s2262_s22 }
 0x2a6   : > { %1360 = vsyncadd %s1346_s26, %s1359_s28  ;;  %p1512_p1 = scmp.ne.s32.totalorder %s2262_s22, 0  ;;  %s1522_s25 = sshll.u32 %s1813_s7, 7 }
 0x2a7   : > { %s2272_s24 = scalar_lea.hbm %s2321_s8, %s1522_s25  ;;  %s1365_s15 = sshll.u32 %s378_s12, 4  ;;  %s1366_s15 = int_to_ptr.vmem [resolvable:$true] %s1365_s15 }
 0x2a8   : > { %s1663_s13 = scalar_lea.vmem %s1366_s15, %s2262_s22  ;;  %s1743_s17 = smov [#allocation8]  }
 0x2a9   : > { %p1664_p3 = scmp.ne.s32.totalorder %s1366_s15, %s1663_s13  ;;  %s1667_s23 = sshll.u32 %s1743_s17, 4  ;;  %s1668_s23 = int_to_ptr.vmem [resolvable:$false] %s1667_s23 }
 0x2aa   : > { %s1669_s20 = scalar_lea.vmem %s1668_s23, 256  ;;  %p1670_p9 = scmp.lt.s32.totalorder %s1366_s15, %s1668_s23 }
 0x2ab   : > { %p1665_p4 = pnand %p1664_p3, %p1512_p1  ;;  %p1671_p10 = scmp.lt.s32.totalorder %s1669_s20, %s1663_s13 }
 0x2ad   : > { %p1666_p7 = pneg %p1665_p4  ;;  %p1672_p13 = por %p1671_p10, %p1670_p9 }
 0x2af   : > { %p1673_p8 = pnand %p1672_p13, %p1666_p7 }
 0x2b1   : > { %1676 = shalt.err (!%p1673_p8)
}
 0x2b2   : > { %s1677_s7 = scalar_lea.hbm %s2272_s24, %s2262_s22  ;;  %s1681_s14 = scalar_lea.hbm %s2321_s8, 528 }
 0x2b3   : > { %p1678_p11 = scmp.ne.s32.totalorder %s2272_s24, %s1677_s7  ;;  %p1682_p0 = scmp.lt.u32.totalorder %s2272_s24, %s2321_s8 }
 0x2b4   : > { %p1683_p6 = scmp.lt.u32.totalorder %s1681_s14, %s1677_s7  ;;  %p1685_p3 = scmp.lt.u32.totalorder %s1677_s7, %s2272_s24 }
 0x2b5   : > { %p1679_p2 = pnand %p1678_p11, %p1512_p1 }
 0x2b6   : > { %p1684_p5 = por %p1683_p6, %p1682_p0 }
 0x2b7   : > { %p1680_p12 = pneg %p1679_p2 }
 0x2b8   : > { %p1686_p4 = por %p1685_p3, %p1684_p5 }
 0x2ba   : > { %p1687_p7 = pnand %p1686_p4, %p1680_p12 }
 0x2bc   : > { %1690 = shalt.err (!%p1687_p7)
}
 0x2bd   : > { %1368 = dma.vmem_to_hbm [thread:$0]  (%p1512_p1), %s1366_s15, %s2262_s22, %s2272_s24, %s1346_s26  }
 0x2be PF: > { %p1530_p9 = scmp.ge.s32.totalorder %s1733_s10, 2  ;;  %s1377_s25 = sand.u32 1, %s1721_s29  }
 0x2bf   : > { %p2331_p10 = scmp.ne.s32.totalorder %s2329_s19, 0  ;;  %s1378_s18 = scalar_lea.sflag [#allocation5], %s1377_s25 }
 0x2c1   : > { %p1527_p13 = pnand %p1530_p9, %p2331_p10 }
 0x2c3   : > { %1716 = dma.done.wait (!%p1527_p13), %s1378_s18, 128  }
 0x2c4   : > { %1718 = vsyncadd (!%p1527_p13), %s1378_s18, 4294967168  ;;  %s2332_s10 = sld [smem:[#allocation12_spill]]  ;;  %s2333_s16 = sld [smem:[#allocation13_spill]] }
 0x2c5   : > { %s2334_s29 = smov %s1725_s30  ;;  %s2335_s30 = smov %s1729_s9 }
 0x2ca   : > { %p25_p8 = scmp.ge.s32.totalorder %s2332_s10, 7   ;;  %s2336_s9 = smov %s2333_s16 }
 0x2cc   :  { %27 = sbr.rel (!%p25_p8) target bundleno = 9 (0x9), region = 110 }
 0x2d3   :  { %1383 = vsyncpa [#allocation4], 1 }
 0x2d4   :  { %1385 = vsyncpa [#allocation4 + $0x1], 1 }
 0x2d5   :  { %1386 = vsyncpa [#allocation7], 1 }
 0x2d6   :  { %1388 = vsyncpa [#allocation7 + $0x1], 1 }
 0x2d7   :  { %1389 = vsyncpa [#allocation5], 1 }
 0x2d8   :  { %1391 = vsyncpa [#allocation5 + $0x1], 1 }

</bundles_post_ra>
